<compile_context>
chip_gen: v6e
topology: v6e:2x2x1
jax: 0.10.0
libtpu: 0.0.40
codegen_flags: <defaults>
</compile_context>

<pallas_src>
import functools

import jax
import jax.numpy as jnp
from jax.experimental import pallas as pl
from jax.experimental.pallas import tpu as pltpu


def predictor_kernel(
    y_ref,                          # (1, 1, ts)   sample values (lane-dense)
    xc_ref,                         # (1, H, 1)    per-batch x_feature @ w1xy_x.T (f32)
    w1y_ref, b1y_ref,               # fc1_y : (H, 1) f32, (H, 1) f32
    w2y_ref, b2y_ref,               # fc2_y : (H, H) bf16, (H, 1) f32
    w1xy_h_ref, b1xy_ref,           # fc1_xy (y half): (H, H) bf16, (H, 1) f32
    w2xy_ref, b2xy_ref,             # fc2_xy: (H, H) bf16, (H, 1) f32
    w3_ref, b3_ref,                 # fc3_xy: (H, 1) f32, (1, 1) f32
    out_ref,                        # (1, 1, ts)
):
    y = y_ref[0]                    # (1, ts)

    # fc1_y: in_features == 1 -> VPU broadcast outer product (no degenerate matmul).
    h = jnp.maximum(w1y_ref[...] * y + b1y_ref[...], 0.0)                      # (H, ts) f32

    # fc2_y: MXU matmul. Weights arrive in bf16; activations are cast at the
    # dot only; accumulation + bias + ReLU stay f32 (v5e-safe elementwise).
    h = jnp.maximum(
        jnp.dot(w2y_ref[...], h.astype(w2y_ref.dtype),
                preferred_element_type=jnp.float32) + b2y_ref[...],
        0.0)                                                                    # (H, ts)

    # fc1_xy on cat([x_feature, y_feature]) = y-half matmul + hoisted per-batch
    # x contribution (computed once in the wrapper, f32).
    xy = jnp.maximum(
        jnp.dot(w1xy_h_ref[...], h.astype(w1xy_h_ref.dtype),
                preferred_element_type=jnp.float32) + xc_ref[0] + b1xy_ref[...],
        0.0)                                                                    # (H, ts)

    # fc2_xy + residual (residual/ReLU in f32).
    xy2 = jnp.maximum(
        jnp.dot(w2xy_ref[...], xy.astype(w2xy_ref.dtype),
                preferred_element_type=jnp.float32) + b2xy_ref[...],
        0.0) + xy                                                               # (H, ts)

    # fc3_xy: out_features == 1 -> sublane multiply-reduce; (1, ts) lane-dense store.
    out_ref[0] = jnp.sum(xy2 * w3_ref[...], axis=0, keepdims=True) + b3_ref[...]


def _round_up(n, m):
    return ((n + m - 1) // m) * m


def _choose_tiling(S, B, max_sample_tile, min_grid_steps=2):
    """Pick (ts, S_pad, n_s) for the sample axis.

    Guarantees: ts is a multiple of 128 (unmasked full-lane stores), ts is
    bounded by max_sample_tile (bounded VMEM, matters most on v7x/v5e),
    ts * n_s == S_pad (exact grid), and — when the problem is big enough —
    B * n_s >= min_grid_steps so the v7x megacore has work for both cores.
    """
    max_tile = max(128, (max_sample_tile // 128) * 128)
    S_al = _round_up(S, 128)
    n_s = max(1, -(-S_al // max_tile))                      # ceil-div
    while B * n_s < min_grid_steps and S_al // (n_s + 1) >= 128:
        n_s += 1
    ts = _round_up(-(-S_al // n_s), 128)
    return ts, ts * n_s, n_s


def toy_predictor_forward(x_feature, y, params, *, max_sample_tile=8192,
                          use_bf16_matmul=True):
    """x_feature: (B, Dx) per-batch feature; y: (B, S) (or (N,) -> B=N, S=1)."""
    if y.ndim == 1:
        y = y.reshape(-1, 1)        # matches PyTorch y.view(-1, 1)
    B, S = y.shape
    Dx = x_feature.shape[-1]

    (w1y, b1y, w2y, b2y, w1xy, b1xy, w2xy, b2xy, w3, b3) = params
    H = w1y.shape[0]
    assert w1xy.shape[1] == Dx + H, "fc1_xy expects cat([x_feature, y_feature])"
    assert w1y.shape[1] == 1, "fc1_y outer-product path assumes input_dim == 1"

    f32 = jnp.float32
    mm_dtype = jnp.bfloat16 if use_bf16_matmul else f32
    col = lambda v: v.reshape(-1, 1).astype(f32)

    # fc1_xy split: the x half is folded into a per-batch (B, H) contribution
    # computed once here in f32; the y half stays an (H, H) matmul in-kernel.
    xc = (x_feature.astype(f32) @ w1xy[:, :Dx].astype(f32).T).reshape(B, H, 1)
    w1xy_h = w1xy[:, Dx:].astype(mm_dtype)

    ts, S_pad, n_s = _choose_tiling(S, B, max_sample_tile)
    y_pad = jnp.pad(y.astype(f32), ((0, 0), (0, S_pad - S))).reshape(B, 1, S_pad)

    def const_spec(shape, single_buffer):
        idx = lambda b, s: (0, 0)
        if single_buffer:
            # Weights never change across the grid -> one VMEM buffer is enough.
            return pl.BlockSpec(shape, idx, pipeline_mode=pl.Buffered(1))
        return pl.BlockSpec(shape, idx)

    def build(single_buffer_weights):
        wspec = functools.partial(const_spec, single_buffer=single_buffer_weights)
        return pl.pallas_call(
            predictor_kernel,
            out_shape=jax.ShapeDtypeStruct((B, 1, S_pad), f32),
            grid_spec=pltpu.PrefetchScalarGridSpec(
                num_scalar_prefetch=0,
                grid=(B, n_s),
                in_specs=[
                    pl.BlockSpec((1, 1, ts), lambda b, s: (b, 0, s)),   # y (lane-dense)
                    pl.BlockSpec((1, H, 1), lambda b, s: (b, 0, 0)),    # xc per batch
                    wspec((H, 1)),    # w1y
                    wspec((H, 1)),    # b1y
                    wspec((H, H)),    # w2y
                    wspec((H, 1)),    # b2y
                    wspec((H, H)),    # w1xy_h
                    wspec((H, 1)),    # b1xy
                    wspec((H, H)),    # w2xy
                    wspec((H, 1)),    # b2xy
                    wspec((H, 1)),    # w3 (column)
                    wspec((1, 1)),    # b3
                ],
                out_specs=pl.BlockSpec((1, 1, ts), lambda b, s: (b, 0, s)),
            ),
            compiler_params=pltpu.CompilerParams(
                dimension_semantics=("parallel", "parallel")),
        )

    operands = (
        y_pad, xc,
        w1y.astype(f32), col(b1y),
        w2y.astype(mm_dtype), col(b2y),
        w1xy_h, col(b1xy),
        w2xy.astype(mm_dtype), col(b2xy),
        w3.reshape(H, 1).astype(f32), b3.reshape(1, 1).astype(f32),
    )

    try:
        out = build(single_buffer_weights=True)(*operands)
    except Exception:
        # If this jax version rejects pipeline_mode=pl.Buffered(1), fall back to
        # default double-buffered weights (negligible VMEM cost at small H).
        out = build(single_buffer_weights=False)(*operands)

    return out.reshape(B, S_pad)[:, :S]


def init_params(key, input_dim, hidden_dim):
    """Deterministic synthetic parameters in PyTorch-native layout:
    weight (out_features, in_features), bias (out_features,)."""
    ks = jax.random.split(key, 10)

    def lin(kw, kb, din, dout):
        w = jax.random.normal(kw, (dout, din), jnp.float32) * 0.1
        b = jax.random.normal(kb, (dout,), jnp.float32) * 0.1
        return w, b

    w1y, b1y = lin(ks[0], ks[1], input_dim, hidden_dim)           # fc1_y
    w2y, b2y = lin(ks[2], ks[3], hidden_dim, hidden_dim)          # fc2_y
    w1xy, b1xy = lin(ks[4], ks[5], 2 * hidden_dim, hidden_dim)    # fc1_xy
    w2xy, b2xy = lin(ks[6], ks[7], hidden_dim, hidden_dim)        # fc2_xy
    w3, b3 = lin(ks[8], ks[9], hidden_dim, 1)                     # fc3_xy
    return (w1y, b1y, w2y, b2y, w1xy, b1xy, w2xy, b2xy, w3, b3)


def reference_forward(x_feature, y, params):
    """Pure-JAX f32 reference matching the PyTorch semantics (weights are (out, in))."""
    (w1y, b1y, w2y, b2y, w1xy, b1xy, w2xy, b2xy, w3, b3) = params
    if y.ndim == 1:
        y = y.reshape(-1, 1)
    B, S = y.shape
    xf = jnp.broadcast_to(x_feature[:, None, :], (B, S, x_feature.shape[-1]))
    xf = xf.reshape(B * S, -1)
    yf = y.reshape(B * S, 1)
    h = jax.nn.relu(yf @ w1y.T + b1y)
    h = jax.nn.relu(h @ w2y.T + b2y)
    xy = jnp.concatenate([xf, h], axis=1)
    xy = jax.nn.relu(xy @ w1xy.T + b1xy)
    xy = jax.nn.relu(xy @ w2xy.T + b2xy) + xy
    return (xy @ w3.T + b3).reshape(B, S)


if __name__ == "__main__":
    # The "x_feature" fed to ToyPredictorNet has hidden_dim features
    # (fc1_xy input is 2*hidden_dim); y is (batch, num_samples).
    batch, num_samples, hidden_dim, input_dim = 4, 128, 32, 1

    key = jax.random.PRNGKey(0)
    kp, kx, ky = jax.random.split(key, 3)
    params = init_params(kp, input_dim, hidden_dim)
    x_feature = jax.random.normal(kx, (batch, hidden_dim), jnp.float32)
    y = jax.random.normal(ky, (batch, num_samples), jnp.float32)

    score = toy_predictor_forward(x_feature, y, params)
    score = jax.block_until_ready(score)

    ref = reference_forward(x_feature, y, params)
    assert score.shape == (batch, num_samples)
    # bf16 MXU operands (f32 accumulation) -> loosened tolerance vs f32 reference.
    assert jnp.allclose(score, ref, atol=2e-2, rtol=2e-2), "mismatch vs reference"

    print("KERNEL_OK")
</pallas_src>

<mosaic_0001>
module attributes {stable_mosaic.version = 11 : i64} {
  func.func @predictor_kernel(%arg0: i32, %arg1: i32, %arg2: memref<1x1x128xf32, #tpu.memory_space<vmem>>, %arg3: memref<1x32x1xf32, #tpu.memory_space<vmem>>, %arg4: memref<32x1xf32, #tpu.memory_space<vmem>>, %arg5: memref<32x1xf32, #tpu.memory_space<vmem>>, %arg6: memref<32x32xbf16, #tpu.memory_space<vmem>>, %arg7: memref<32x1xf32, #tpu.memory_space<vmem>>, %arg8: memref<32x32xbf16, #tpu.memory_space<vmem>>, %arg9: memref<32x1xf32, #tpu.memory_space<vmem>>, %arg10: memref<32x32xbf16, #tpu.memory_space<vmem>>, %arg11: memref<32x1xf32, #tpu.memory_space<vmem>>, %arg12: memref<32x1xf32, #tpu.memory_space<vmem>>, %arg13: memref<1x1xf32, #tpu.memory_space<vmem>>, %arg14: memref<1x1x128xf32, #tpu.memory_space<vmem>>) attributes {dimension_semantics = [#tpu.dimension_semantics<parallel>, #tpu.dimension_semantics<parallel>], iteration_bounds = array<i64: 4, 1>, scalar_prefetch = 0 : i64, scratch_operands = 0 : i64, tpu.core_type = #tpu.core_type<tc>, window_params = [{transform_indices = @transform_0, window_bounds = array<i64: 1, 1, 128>}, {transform_indices = @transform_1, window_bounds = array<i64: 1, 32, 1>}, {pipeline_mode = #tpu.pipeline_mode<synchronous>, transform_indices = @transform_2, window_bounds = array<i64: 32, 1>}, {pipeline_mode = #tpu.pipeline_mode<synchronous>, transform_indices = @transform_3, window_bounds = array<i64: 32, 1>}, {pipeline_mode = #tpu.pipeline_mode<synchronous>, transform_indices = @transform_4, window_bounds = array<i64: 32, 32>}, {pipeline_mode = #tpu.pipeline_mode<synchronous>, transform_indices = @transform_5, window_bounds = array<i64: 32, 1>}, {pipeline_mode = #tpu.pipeline_mode<synchronous>, transform_indices = @transform_6, window_bounds = array<i64: 32, 32>}, {pipeline_mode = #tpu.pipeline_mode<synchronous>, transform_indices = @transform_7, window_bounds = array<i64: 32, 1>}, {pipeline_mode = #tpu.pipeline_mode<synchronous>, transform_indices = @transform_8, window_bounds = array<i64: 32, 32>}, {pipeline_mode = #tpu.pipeline_mode<synchronous>, transform_indices = @transform_9, window_bounds = array<i64: 32, 1>}, {pipeline_mode = #tpu.pipeline_mode<synchronous>, transform_indices = @transform_10, window_bounds = array<i64: 32, 1>}, {pipeline_mode = #tpu.pipeline_mode<synchronous>, transform_indices = @transform_11, window_bounds = array<i64: 1, 1>}, {transform_indices = @transform_12, window_bounds = array<i64: 1, 1, 128>}]} {
    %c0 = arith.constant 0 : index
    %c0_0 = arith.constant 0 : index
    %c0_1 = arith.constant 0 : index
    %0 = vector.load %arg2[%c0, %c0_0, %c0_1] : memref<1x1x128xf32, #tpu.memory_space<vmem>>, vector<1x1x128xf32>
    %1 = vector.shape_cast %0 : vector<1x1x128xf32> to vector<1x128xf32>
    %c0_2 = arith.constant 0 : index
    %c0_3 = arith.constant 0 : index
    %2 = vector.load %arg4[%c0_2, %c0_3] : memref<32x1xf32, #tpu.memory_space<vmem>>, vector<32x1xf32>
    %3 = vector.broadcast %2 : vector<32x1xf32> to vector<32x128xf32>
    %4 = vector.broadcast %1 : vector<1x128xf32> to vector<32x128xf32>
    %5 = arith.mulf %3, %4 : vector<32x128xf32>
    %c0_4 = arith.constant 0 : index
    %c0_5 = arith.constant 0 : index
    %6 = vector.load %arg5[%c0_4, %c0_5] : memref<32x1xf32, #tpu.memory_space<vmem>>, vector<32x1xf32>
    %7 = vector.broadcast %6 : vector<32x1xf32> to vector<32x128xf32>
    %8 = arith.addf %5, %7 : vector<32x128xf32>
    %cst = arith.constant 0.000000e+00 : f32
    %9 = vector.broadcast %cst : f32 to vector<32x128xf32>
    %10 = arith.maximumf %8, %9 : vector<32x128xf32>
    %c0_6 = arith.constant 0 : index
    %c0_7 = arith.constant 0 : index
    %11 = vector.load %arg6[%c0_6, %c0_7] : memref<32x32xbf16, #tpu.memory_space<vmem>>, vector<32x32xbf16>
    %12 = arith.truncf %10 : vector<32x128xf32> to vector<32x128xbf16>
    %cst_8 = arith.constant dense<0.000000e+00> : vector<32x128xf32>
    %13 = tpu.matmul %11, %12, %cst_8 {dimension_numbers = #tpu.dot_dimension_numbers<[1], [0], [0], [1], [0, 0, 1, 1], [], []>} : vector<32x32xbf16>, vector<32x128xbf16>, vector<32x128xf32> -> vector<32x128xf32>
    %c0_9 = arith.constant 0 : index
    %c0_10 = arith.constant 0 : index
    %14 = vector.load %arg7[%c0_9, %c0_10] : memref<32x1xf32, #tpu.memory_space<vmem>>, vector<32x1xf32>
    %15 = vector.broadcast %14 : vector<32x1xf32> to vector<32x128xf32>
    %16 = arith.addf %13, %15 : vector<32x128xf32>
    %cst_11 = arith.constant 0.000000e+00 : f32
    %17 = vector.broadcast %cst_11 : f32 to vector<32x128xf32>
    %18 = arith.maximumf %16, %17 : vector<32x128xf32>
    %c0_12 = arith.constant 0 : index
    %c0_13 = arith.constant 0 : index
    %19 = vector.load %arg8[%c0_12, %c0_13] : memref<32x32xbf16, #tpu.memory_space<vmem>>, vector<32x32xbf16>
    %20 = arith.truncf %18 : vector<32x128xf32> to vector<32x128xbf16>
    %cst_14 = arith.constant dense<0.000000e+00> : vector<32x128xf32>
    %21 = tpu.matmul %19, %20, %cst_14 {dimension_numbers = #tpu.dot_dimension_numbers<[1], [0], [0], [1], [0, 0, 1, 1], [], []>} : vector<32x32xbf16>, vector<32x128xbf16>, vector<32x128xf32> -> vector<32x128xf32>
    %c0_15 = arith.constant 0 : index
    %c0_16 = arith.constant 0 : index
    %c0_17 = arith.constant 0 : index
    %22 = vector.load %arg3[%c0_15, %c0_16, %c0_17] : memref<1x32x1xf32, #tpu.memory_space<vmem>>, vector<1x32x1xf32>
    %23 = vector.shape_cast %22 : vector<1x32x1xf32> to vector<32x1xf32>
    %24 = vector.broadcast %23 : vector<32x1xf32> to vector<32x128xf32>
    %25 = arith.addf %21, %24 : vector<32x128xf32>
    %c0_18 = arith.constant 0 : index
    %c0_19 = arith.constant 0 : index
    %26 = vector.load %arg9[%c0_18, %c0_19] : memref<32x1xf32, #tpu.memory_space<vmem>>, vector<32x1xf32>
    %27 = vector.broadcast %26 : vector<32x1xf32> to vector<32x128xf32>
    %28 = arith.addf %25, %27 : vector<32x128xf32>
    %cst_20 = arith.constant 0.000000e+00 : f32
    %29 = vector.broadcast %cst_20 : f32 to vector<32x128xf32>
    %30 = arith.maximumf %28, %29 : vector<32x128xf32>
    %c0_21 = arith.constant 0 : index
    %c0_22 = arith.constant 0 : index
    %31 = vector.load %arg10[%c0_21, %c0_22] : memref<32x32xbf16, #tpu.memory_space<vmem>>, vector<32x32xbf16>
    %32 = arith.truncf %30 : vector<32x128xf32> to vector<32x128xbf16>
    %cst_23 = arith.constant dense<0.000000e+00> : vector<32x128xf32>
    %33 = tpu.matmul %31, %32, %cst_23 {dimension_numbers = #tpu.dot_dimension_numbers<[1], [0], [0], [1], [0, 0, 1, 1], [], []>} : vector<32x32xbf16>, vector<32x128xbf16>, vector<32x128xf32> -> vector<32x128xf32>
    %c0_24 = arith.constant 0 : index
    %c0_25 = arith.constant 0 : index
    %34 = vector.load %arg11[%c0_24, %c0_25] : memref<32x1xf32, #tpu.memory_space<vmem>>, vector<32x1xf32>
    %35 = vector.broadcast %34 : vector<32x1xf32> to vector<32x128xf32>
    %36 = arith.addf %33, %35 : vector<32x128xf32>
    %cst_26 = arith.constant 0.000000e+00 : f32
    %37 = vector.broadcast %cst_26 : f32 to vector<32x128xf32>
    %38 = arith.maximumf %36, %37 : vector<32x128xf32>
    %39 = arith.addf %38, %30 : vector<32x128xf32>
    %c0_27 = arith.constant 0 : index
    %c0_28 = arith.constant 0 : index
    %40 = vector.load %arg12[%c0_27, %c0_28] : memref<32x1xf32, #tpu.memory_space<vmem>>, vector<32x1xf32>
    %41 = vector.broadcast %40 : vector<32x1xf32> to vector<32x128xf32>
    %42 = arith.mulf %39, %41 : vector<32x128xf32>
    %cst_29 = arith.constant dense<0.000000e+00> : vector<128xf32>
    %43 = vector.multi_reduction <add>, %42, %cst_29 [0] : vector<32x128xf32> to vector<128xf32>
    %44 = vector.shape_cast %43 : vector<128xf32> to vector<1x128xf32>
    %c0_30 = arith.constant 0 : index
    %c0_31 = arith.constant 0 : index
    %45 = vector.load %arg13[%c0_30, %c0_31] : memref<1x1xf32, #tpu.memory_space<vmem>>, vector<1x1xf32>
    %46 = vector.broadcast %45 : vector<1x1xf32> to vector<1x128xf32>
    %47 = arith.addf %44, %46 : vector<1x128xf32>
    %c0_32 = arith.constant 0 : index
    %c0_33 = arith.constant 0 : index
    %c0_34 = arith.constant 0 : index
    %48 = vector.load %arg14[%c0_32, %c0_33, %c0_34] : memref<1x1x128xf32, #tpu.memory_space<vmem>>, vector<1x1x128xf32>
    %49 = vector.shape_cast %48 : vector<1x1x128xf32> to vector<1x128xf32>
    %50 = vector.shape_cast %47 : vector<1x128xf32> to vector<1x1x128xf32>
    tpu.vector_store %arg14[%c0_32, %c0_33, %c0_34], %50 {strides = array<i32>} : memref<1x1x128xf32, #tpu.memory_space<vmem>>, vector<1x1x128xf32>,
    return
  }
  func.func @transform_0(%arg0: i32, %arg1: i32) -> (i32, i32, i32) {
    %c0_i32 = arith.constant 0 : i32
    %c0_i32_0 = arith.constant 0 : i32
    return %arg0, %c0_i32, %arg1 : i32, i32, i32
  }
  func.func @transform_1(%arg0: i32, %arg1: i32) -> (i32, i32, i32) {
    %c0_i32 = arith.constant 0 : i32
    %c0_i32_0 = arith.constant 0 : i32
    %c0_i32_1 = arith.constant 0 : i32
    return %arg0, %c0_i32, %c0_i32_0 : i32, i32, i32
  }
  func.func @transform_2(%arg0: i32, %arg1: i32) -> (i32, i32) {
    %c0_i32 = arith.constant 0 : i32
    %c0_i32_0 = arith.constant 0 : i32
    %c0_i32_1 = arith.constant 0 : i32
    return %c0_i32, %c0_i32_0 : i32, i32
  }
  func.func @transform_3(%arg0: i32, %arg1: i32) -> (i32, i32) {
    %c0_i32 = arith.constant 0 : i32
    %c0_i32_0 = arith.constant 0 : i32
    %c0_i32_1 = arith.constant 0 : i32
    return %c0_i32, %c0_i32_0 : i32, i32
  }
  func.func @transform_4(%arg0: i32, %arg1: i32) -> (i32, i32) {
    %c0_i32 = arith.constant 0 : i32
    %c0_i32_0 = arith.constant 0 : i32
    %c0_i32_1 = arith.constant 0 : i32
    return %c0_i32, %c0_i32_0 : i32, i32
  }
  func.func @transform_5(%arg0: i32, %arg1: i32) -> (i32, i32) {
    %c0_i32 = arith.constant 0 : i32
    %c0_i32_0 = arith.constant 0 : i32
    %c0_i32_1 = arith.constant 0 : i32
    return %c0_i32, %c0_i32_0 : i32, i32
  }
  func.func @transform_6(%arg0: i32, %arg1: i32) -> (i32, i32) {
    %c0_i32 = arith.constant 0 : i32
    %c0_i32_0 = arith.constant 0 : i32
    %c0_i32_1 = arith.constant 0 : i32
    return %c0_i32, %c0_i32_0 : i32, i32
  }
  func.func @transform_7(%arg0: i32, %arg1: i32) -> (i32, i32) {
    %c0_i32 = arith.constant 0 : i32
    %c0_i32_0 = arith.constant 0 : i32
    %c0_i32_1 = arith.constant 0 : i32
    return %c0_i32, %c0_i32_0 : i32, i32
  }
  func.func @transform_8(%arg0: i32, %arg1: i32) -> (i32, i32) {
    %c0_i32 = arith.constant 0 : i32
    %c0_i32_0 = arith.constant 0 : i32
    %c0_i32_1 = arith.constant 0 : i32
    return %c0_i32, %c0_i32_0 : i32, i32
  }
  func.func @transform_9(%arg0: i32, %arg1: i32) -> (i32, i32) {
    %c0_i32 = arith.constant 0 : i32
    %c0_i32_0 = arith.constant 0 : i32
    %c0_i32_1 = arith.constant 0 : i32
    return %c0_i32, %c0_i32_0 : i32, i32
  }
  func.func @transform_10(%arg0: i32, %arg1: i32) -> (i32, i32) {
    %c0_i32 = arith.constant 0 : i32
    %c0_i32_0 = arith.constant 0 : i32
    %c0_i32_1 = arith.constant 0 : i32
    return %c0_i32, %c0_i32_0 : i32, i32
  }
  func.func @transform_11(%arg0: i32, %arg1: i32) -> (i32, i32) {
    %c0_i32 = arith.constant 0 : i32
    %c0_i32_0 = arith.constant 0 : i32
    %c0_i32_1 = arith.constant 0 : i32
    return %c0_i32, %c0_i32_0 : i32, i32
  }
  func.func @transform_12(%arg0: i32, %arg1: i32) -> (i32, i32, i32) {
    %c0_i32 = arith.constant 0 : i32
    %c0_i32_0 = arith.constant 0 : i32
    return %arg0, %c0_i32, %arg1 : i32, i32, i32
  }
}

module attributes {stable_mosaic.version = 11 : i64} {
  func.func @predictor_kernel(%arg0: i32, %arg1: i32, %arg2: memref<1x1x128xf32, #tpu.memory_space<vmem>>, %arg3: memref<1x32x1xf32, #tpu.memory_space<vmem>>, %arg4: memref<32x1xf32, #tpu.memory_space<vmem>>, %arg5: memref<32x1xf32, #tpu.memory_space<vmem>>, %arg6: memref<32x32xbf16, #tpu.memory_space<vmem>>, %arg7: memref<32x1xf32, #tpu.memory_space<vmem>>, %arg8: memref<32x32xbf16, #tpu.memory_space<vmem>>, %arg9: memref<32x1xf32, #tpu.memory_space<vmem>>, %arg10: memref<32x32xbf16, #tpu.memory_space<vmem>>, %arg11: memref<32x1xf32, #tpu.memory_space<vmem>>, %arg12: memref<32x1xf32, #tpu.memory_space<vmem>>, %arg13: memref<1x1xf32, #tpu.memory_space<vmem>>, %arg14: memref<1x1x128xf32, #tpu.memory_space<vmem>>) attributes {dimension_semantics = [#tpu.dimension_semantics<parallel>, #tpu.dimension_semantics<parallel>], iteration_bounds = array<i64: 4, 1>, scalar_prefetch = 0 : i64, scratch_operands = 0 : i64, tpu.core_type = #tpu.core_type<tc>, window_params = [{transform_indices = @transform_0, window_bounds = array<i64: 1, 1, 128>}, {transform_indices = @transform_1, window_bounds = array<i64: 1, 32, 1>}, {pipeline_mode = #tpu.pipeline_mode<synchronous>, transform_indices = @transform_2, window_bounds = array<i64: 32, 1>}, {pipeline_mode = #tpu.pipeline_mode<synchronous>, transform_indices = @transform_3, window_bounds = array<i64: 32, 1>}, {pipeline_mode = #tpu.pipeline_mode<synchronous>, transform_indices = @transform_4, window_bounds = array<i64: 32, 32>}, {pipeline_mode = #tpu.pipeline_mode<synchronous>, transform_indices = @transform_5, window_bounds = array<i64: 32, 1>}, {pipeline_mode = #tpu.pipeline_mode<synchronous>, transform_indices = @transform_6, window_bounds = array<i64: 32, 32>}, {pipeline_mode = #tpu.pipeline_mode<synchronous>, transform_indices = @transform_7, window_bounds = array<i64: 32, 1>}, {pipeline_mode = #tpu.pipeline_mode<synchronous>, transform_indices = @transform_8, window_bounds = array<i64: 32, 32>}, {pipeline_mode = #tpu.pipeline_mode<synchronous>, transform_indices = @transform_9, window_bounds = array<i64: 32, 1>}, {pipeline_mode = #tpu.pipeline_mode<synchronous>, transform_indices = @transform_10, window_bounds = array<i64: 32, 1>}, {pipeline_mode = #tpu.pipeline_mode<synchronous>, transform_indices = @transform_11, window_bounds = array<i64: 1, 1>}, {transform_indices = @transform_12, window_bounds = array<i64: 1, 1, 128>}]} {
    %c0 = arith.constant 0 : index
    %c0_0 = arith.constant 0 : index
    %c0_1 = arith.constant 0 : index
    %0 = vector.load %arg2[%c0, %c0_0, %c0_1] : memref<1x1x128xf32, #tpu.memory_space<vmem>>, vector<1x1x128xf32>
    %1 = vector.shape_cast %0 : vector<1x1x128xf32> to vector<1x128xf32>
    %c0_2 = arith.constant 0 : index
    %c0_3 = arith.constant 0 : index
    %2 = vector.load %arg4[%c0_2, %c0_3] : memref<32x1xf32, #tpu.memory_space<vmem>>, vector<32x1xf32>
    %3 = vector.broadcast %2 : vector<32x1xf32> to vector<32x128xf32>
    %4 = vector.broadcast %1 : vector<1x128xf32> to vector<32x128xf32>
    %5 = arith.mulf %3, %4 : vector<32x128xf32>
    %c0_4 = arith.constant 0 : index
    %c0_5 = arith.constant 0 : index
    %6 = vector.load %arg5[%c0_4, %c0_5] : memref<32x1xf32, #tpu.memory_space<vmem>>, vector<32x1xf32>
    %7 = vector.broadcast %6 : vector<32x1xf32> to vector<32x128xf32>
    %8 = arith.addf %5, %7 : vector<32x128xf32>
    %cst = arith.constant 0.000000e+00 : f32
    %9 = vector.broadcast %cst : f32 to vector<32x128xf32>
    %10 = arith.maximumf %8, %9 : vector<32x128xf32>
    %c0_6 = arith.constant 0 : index
    %c0_7 = arith.constant 0 : index
    %11 = vector.load %arg6[%c0_6, %c0_7] : memref<32x32xbf16, #tpu.memory_space<vmem>>, vector<32x32xbf16>
    %12 = arith.truncf %10 : vector<32x128xf32> to vector<32x128xbf16>
    %cst_8 = arith.constant dense<0.000000e+00> : vector<32x128xf32>
    %13 = tpu.matmul %11, %12, %cst_8 {dimension_numbers = #tpu.dot_dimension_numbers<[1], [0], [0], [1], [0, 0, 1, 1], [], []>} : vector<32x32xbf16>, vector<32x128xbf16>, vector<32x128xf32> -> vector<32x128xf32>
    %c0_9 = arith.constant 0 : index
    %c0_10 = arith.constant 0 : index
    %14 = vector.load %arg7[%c0_9, %c0_10] : memref<32x1xf32, #tpu.memory_space<vmem>>, vector<32x1xf32>
    %15 = vector.broadcast %14 : vector<32x1xf32> to vector<32x128xf32>
    %16 = arith.addf %13, %15 : vector<32x128xf32>
    %cst_11 = arith.constant 0.000000e+00 : f32
    %17 = vector.broadcast %cst_11 : f32 to vector<32x128xf32>
    %18 = arith.maximumf %16, %17 : vector<32x128xf32>
    %c0_12 = arith.constant 0 : index
    %c0_13 = arith.constant 0 : index
    %19 = vector.load %arg8[%c0_12, %c0_13] : memref<32x32xbf16, #tpu.memory_space<vmem>>, vector<32x32xbf16>
    %20 = arith.truncf %18 : vector<32x128xf32> to vector<32x128xbf16>
    %cst_14 = arith.constant dense<0.000000e+00> : vector<32x128xf32>
    %21 = tpu.matmul %19, %20, %cst_14 {dimension_numbers = #tpu.dot_dimension_numbers<[1], [0], [0], [1], [0, 0, 1, 1], [], []>} : vector<32x32xbf16>, vector<32x128xbf16>, vector<32x128xf32> -> vector<32x128xf32>
    %c0_15 = arith.constant 0 : index
    %c0_16 = arith.constant 0 : index
    %c0_17 = arith.constant 0 : index
    %22 = vector.load %arg3[%c0_15, %c0_16, %c0_17] : memref<1x32x1xf32, #tpu.memory_space<vmem>>, vector<1x32x1xf32>
    %23 = vector.shape_cast %22 : vector<1x32x1xf32> to vector<32x1xf32>
    %24 = vector.broadcast %23 : vector<32x1xf32> to vector<32x128xf32>
    %25 = arith.addf %21, %24 : vector<32x128xf32>
    %c0_18 = arith.constant 0 : index
    %c0_19 = arith.constant 0 : index
    %26 = vector.load %arg9[%c0_18, %c0_19] : memref<32x1xf32, #tpu.memory_space<vmem>>, vector<32x1xf32>
    %27 = vector.broadcast %26 : vector<32x1xf32> to vector<32x128xf32>
    %28 = arith.addf %25, %27 : vector<32x128xf32>
    %cst_20 = arith.constant 0.000000e+00 : f32
    %29 = vector.broadcast %cst_20 : f32 to vector<32x128xf32>
    %30 = arith.maximumf %28, %29 : vector<32x128xf32>
    %c0_21 = arith.constant 0 : index
    %c0_22 = arith.constant 0 : index
    %31 = vector.load %arg10[%c0_21, %c0_22] : memref<32x32xbf16, #tpu.memory_space<vmem>>, vector<32x32xbf16>
    %32 = arith.truncf %30 : vector<32x128xf32> to vector<32x128xbf16>
    %cst_23 = arith.constant dense<0.000000e+00> : vector<32x128xf32>
    %33 = tpu.matmul %31, %32, %cst_23 {dimension_numbers = #tpu.dot_dimension_numbers<[1], [0], [0], [1], [0, 0, 1, 1], [], []>} : vector<32x32xbf16>, vector<32x128xbf16>, vector<32x128xf32> -> vector<32x128xf32>
    %c0_24 = arith.constant 0 : index
    %c0_25 = arith.constant 0 : index
    %34 = vector.load %arg11[%c0_24, %c0_25] : memref<32x1xf32, #tpu.memory_space<vmem>>, vector<32x1xf32>
    %35 = vector.broadcast %34 : vector<32x1xf32> to vector<32x128xf32>
    %36 = arith.addf %33, %35 : vector<32x128xf32>
    %cst_26 = arith.constant 0.000000e+00 : f32
    %37 = vector.broadcast %cst_26 : f32 to vector<32x128xf32>
    %38 = arith.maximumf %36, %37 : vector<32x128xf32>
    %39 = arith.addf %38, %30 : vector<32x128xf32>
    %c0_27 = arith.constant 0 : index
    %c0_28 = arith.constant 0 : index
    %40 = vector.load %arg12[%c0_27, %c0_28] : memref<32x1xf32, #tpu.memory_space<vmem>>, vector<32x1xf32>
    %41 = vector.broadcast %40 : vector<32x1xf32> to vector<32x128xf32>
    %42 = arith.mulf %39, %41 : vector<32x128xf32>
    %cst_29 = arith.constant dense<0.000000e+00> : vector<128xf32>
    %43 = vector.multi_reduction <add>, %42, %cst_29 [0] : vector<32x128xf32> to vector<128xf32>
    %44 = vector.shape_cast %43 : vector<128xf32> to vector<1x128xf32>
    %c0_30 = arith.constant 0 : index
    %c0_31 = arith.constant 0 : index
    %45 = vector.load %arg13[%c0_30, %c0_31] : memref<1x1xf32, #tpu.memory_space<vmem>>, vector<1x1xf32>
    %46 = vector.broadcast %45 : vector<1x1xf32> to vector<1x128xf32>
    %47 = arith.addf %44, %46 : vector<1x128xf32>
    %c0_32 = arith.constant 0 : index
    %c0_33 = arith.constant 0 : index
    %c0_34 = arith.constant 0 : index
    %48 = vector.load %arg14[%c0_32, %c0_33, %c0_34] : memref<1x1x128xf32, #tpu.memory_space<vmem>>, vector<1x1x128xf32>
    %49 = vector.shape_cast %48 : vector<1x1x128xf32> to vector<1x128xf32>
    %50 = vector.shape_cast %47 : vector<1x128xf32> to vector<1x1x128xf32>
    tpu.vector_store %arg14[%c0_32, %c0_33, %c0_34], %50 {strides = array<i32>} : memref<1x1x128xf32, #tpu.memory_space<vmem>>, vector<1x1x128xf32>,
    return
  }
  func.func @transform_0(%arg0: i32, %arg1: i32) -> (i32, i32, i32) {
    %c0_i32 = arith.constant 0 : i32
    %c0_i32_0 = arith.constant 0 : i32
    return %arg0, %c0_i32, %arg1 : i32, i32, i32
  }
  func.func @transform_1(%arg0: i32, %arg1: i32) -> (i32, i32, i32) {
    %c0_i32 = arith.constant 0 : i32
    %c0_i32_0 = arith.constant 0 : i32
    %c0_i32_1 = arith.constant 0 : i32
    return %arg0, %c0_i32, %c0_i32_0 : i32, i32, i32
  }
  func.func @transform_2(%arg0: i32, %arg1: i32) -> (i32, i32) {
    %c0_i32 = arith.constant 0 : i32
    %c0_i32_0 = arith.constant 0 : i32
    %c0_i32_1 = arith.constant 0 : i32
    return %c0_i32, %c0_i32_0 : i32, i32
  }
  func.func @transform_3(%arg0: i32, %arg1: i32) -> (i32, i32) {
    %c0_i32 = arith.constant 0 : i32
    %c0_i32_0 = arith.constant 0 : i32
    %c0_i32_1 = arith.constant 0 : i32
    return %c0_i32, %c0_i32_0 : i32, i32
  }
  func.func @transform_4(%arg0: i32, %arg1: i32) -> (i32, i32) {
    %c0_i32 = arith.constant 0 : i32
    %c0_i32_0 = arith.constant 0 : i32
    %c0_i32_1 = arith.constant 0 : i32
    return %c0_i32, %c0_i32_0 : i32, i32
  }
  func.func @transform_5(%arg0: i32, %arg1: i32) -> (i32, i32) {
    %c0_i32 = arith.constant 0 : i32
    %c0_i32_0 = arith.constant 0 : i32
    %c0_i32_1 = arith.constant 0 : i32
    return %c0_i32, %c0_i32_0 : i32, i32
  }
  func.func @transform_6(%arg0: i32, %arg1: i32) -> (i32, i32) {
    %c0_i32 = arith.constant 0 : i32
    %c0_i32_0 = arith.constant 0 : i32
    %c0_i32_1 = arith.constant 0 : i32
    return %c0_i32, %c0_i32_0 : i32, i32
  }
  func.func @transform_7(%arg0: i32, %arg1: i32) -> (i32, i32) {
    %c0_i32 = arith.constant 0 : i32
    %c0_i32_0 = arith.constant 0 : i32
    %c0_i32_1 = arith.constant 0 : i32
    return %c0_i32, %c0_i32_0 : i32, i32
  }
  func.func @transform_8(%arg0: i32, %arg1: i32) -> (i32, i32) {
    %c0_i32 = arith.constant 0 : i32
    %c0_i32_0 = arith.constant 0 : i32
    %c0_i32_1 = arith.constant 0 : i32
    return %c0_i32, %c0_i32_0 : i32, i32
  }
  func.func @transform_9(%arg0: i32, %arg1: i32) -> (i32, i32) {
    %c0_i32 = arith.constant 0 : i32
    %c0_i32_0 = arith.constant 0 : i32
    %c0_i32_1 = arith.constant 0 : i32
    return %c0_i32, %c0_i32_0 : i32, i32
  }
  func.func @transform_10(%arg0: i32, %arg1: i32) -> (i32, i32) {
    %c0_i32 = arith.constant 0 : i32
    %c0_i32_0 = arith.constant 0 : i32
    %c0_i32_1 = arith.constant 0 : i32
    return %c0_i32, %c0_i32_0 : i32, i32
  }
  func.func @transform_11(%arg0: i32, %arg1: i32) -> (i32, i32) {
    %c0_i32 = arith.constant 0 : i32
    %c0_i32_0 = arith.constant 0 : i32
    %c0_i32_1 = arith.constant 0 : i32
    return %c0_i32, %c0_i32_0 : i32, i32
  }
  func.func @transform_12(%arg0: i32, %arg1: i32) -> (i32, i32, i32) {
    %c0_i32 = arith.constant 0 : i32
    %c0_i32_0 = arith.constant 0 : i32
    return %arg0, %c0_i32, %arg1 : i32, i32, i32
  }
}

</mosaic_0001>

<bundles_post_ra>
// kernel: tpu_custom_call.1
= control target key start
LH: loop header
LB: loop body
LE: loop exit
PB: predicated region body
PF: predicated region fallthrough
CT: control target
= control target key end

     0   :  { %s1463_s0 = inlined_call_operand.vmem [shape: f32[4,1,128], index: 0, kind: input, shape index: {}]   ;;  %s1464_s1 = inlined_call_operand.vmem [shape: f32[4,32,1], index: 1, kind: input, shape index: {}]   ;;  %s1465_s2 = inlined_call_operand.vmem [shape: f32[32,1], index: 2, kind: input, shape index: {}]   ;;  %s1466_s3 = inlined_call_operand.vmem [shape: f32[32,1], index: 3, kind: input, shape index: {}]   ;;  %s1467_s4 = inlined_call_operand.vmem [shape: bf16[32,32], index: 4, kind: input, shape index: {}]   ;;  %s1468_s5 = inlined_call_operand.vmem [shape: f32[32,1], index: 5, kind: input, shape index: {}]   ;;  %s1469_s6 = inlined_call_operand.vmem [shape: bf16[32,32], index: 6, kind: input, shape index: {}]   ;;  %s1470_s7 = inlined_call_operand.vmem [shape: f32[32,1], index: 7, kind: input, shape index: {}]   ;;  %s1471_s8 = inlined_call_operand.vmem [shape: bf16[32,32], index: 8, kind: input, shape index: {}]   ;;  %s1472_s9 = inlined_call_operand.vmem [shape: f32[32,1], index: 9, kind: input, shape index: {}]   ;;  %s1473_s10 = inlined_call_operand.vmem [shape: f32[32,1], index: 10, kind: input, shape index: {}]   ;;  %s1474_s11 = inlined_call_operand.<no memory space> [shape: f32[1,1], index: 11, kind: input, shape index: {}]   ;;  %s1475_s12 = inlined_call_operand.hbm [shape: f32[4,1,128], index: 12, kind: output, shape index: {}]  }
   0x1   :  { %1477 = sst [smem:[#allocation7_spill]] %s1465_s2  ;;  %v17_v0 = vstv %s1474_s11 }
   0x2   :  { %1478 = sst [smem:[#allocation8_spill]] %s1466_s3  ;;  %18 = vst [vmem:[#allocation2] sm:$0x1] %v17_v0 }
   0x3   :  { %19 = vsyncpa [#allocation4], 0 }
   0x4   :  { %21 = vsyncpa [#allocation4 + $0x1], 0  ;;  %s1261_s23 = smov 0   ;;  %s1263_s24 = smov 0  }
   0x5   :  { %s1265_s25 = smov 0   ;;  %s1267_s26 = smov 0  }
   0x6   :  { %s1269_s27 = smov 0   ;;  %s1271_s28 = smov 0  }
   0x7 LB: > { %s989_s11 = sadd.s32 4294967295, %s1189_s28   ;;  %s990_s29 = sadd.s32 4294967294, %s1189_s28   ;;  %s1189_s28 = sphi %s1271_s28, %s27_s28   ;;  %s1185_s27 = sphi %s1269_s27, %s1489_s27   ;;  %s1181_s26 = sphi %s1267_s26, %s1488_s26   ;;  %s1177_s25 = sphi %s1265_s25, %s1487_s25   ;;  %s1173_s24 = sphi %s1263_s24, %s1486_s24   ;;  %s1169_s23 = sphi %s1261_s23, %s1485_s23  }
   0x8   : > { %s39_s30 = sadd.s32 1, %s1185_s27  ;;  %s312_s13 = sadd.s32 1, %s1177_s25 }
   0x9   : > { %p41_p0 = scmp.ge.s32.totalorder %s39_s30, 4  ;;  %p322_p1 = scmp.ne.s32.totalorder %s1177_s25, %s1173_s24 }
   0xa   : > { %p323_p2 = scmp.eq.s32.totalorder %s989_s11, 3  ;;  %p328_p3 = scmp.ne.s32.totalorder %s1173_s24, %s1169_s23 }
   0xb   : > { %s1491_s30 = smov (%p41_p0, %s39_s30), 0  ;;  %p329_p5 = scmp.eq.s32.totalorder %s990_s29, 3 }
   0xc   : > { %1479 = sst [smem:[#allocation6_spill]] %s1491_s30  ;;  %p1301_p4 = por %p323_p2, %p322_p1 }
   0xd   : > { %s307_s15 = ssub.s32 %s1185_s27, %s1491_s30  ;;  %p993_p6 = scmp.ge.s32.totalorder %s1189_s28, 1 }
   0xe   : > { %p310_p7 = scmp.eq.s32.totalorder %s307_s15, 0  ;;  %p1308_p8 = por %p329_p5, %p328_p3 }
   0xf   : > { %p394_p9 = scmp.lt.s32.totalorder %s1189_s28, 5 }
  0x10   : > { %s1314_s17 = scalar_select %p310_p7, %s1177_s25, %s312_s13  }
  0x11   : > { %p395_p10 = pnand %p993_p6, %p394_p9 }
  0x12   : > { %s1482_s3 = sld [smem:[#allocation8_spill]] (!%p395_p10)  ;;  %p441_p11 = scmp.lt.s32.totalorder (!%p395_p10), %s1181_s26, 3 }
  0x13   : > { %398 = sbr.rel (%p395_p10) target bundleno = 836 (0x344), region = 68  ;;  %s1483_s2 = sld [smem:[#allocation7_spill]] (!%p395_p10) }
  0x14   : > { %s439_s22 = sand.u32 (!%p395_p10), 1, %s1173_s24   ;;  %s1192_s20 = smov (!%p395_p10), [#allocation3]  }
  0x15   : > { %s900_s15 = scalar_lea.sflag (!%p395_p10), [#allocation4], %s439_s22 }
  0x18   : > { %v490_v1 = vld [vmem:[%s1482_s3 + $0x10] sm:$0xff]  ;;  %v1191_v3 = vmov 0   ;;  %v491_v4 = vld [vmem:[%s1482_s3 + $0x18] sm:$0xff]  ;;  %v489_v8 = vld [vmem:[%s1482_s3 + $0x8] sm:$0xff]  ;;  %s1342_s29 = scalar_select %p441_p11, %s1181_s26, 3  ;;  %vm560_vm0 = vcmask 261120  }
  0x19   : > { %v456_v2 = vld [vmem:[%s1483_s2 + $0x10] sm:$0xff]  ;;  %1106 = vset.pattern.permute.xlu1 %v1191_v3  ;;  %1105 = vset.pattern.permute.xlu0 %v1191_v3  ;;  %v457_v5 = vld [vmem:[%s1483_s2 + $0x18] sm:$0xff]  ;;  %v455_v6 = vld [vmem:[%s1483_s2 + $0x8] sm:$0xff] }
  0x1a   : > { %504 = vperm.xlu1 %1106, %v490_v1   ;;  %470 = vperm.xlu0 %1105, %v456_v2   ;;  %v454_v7 = vld [vmem:[%s1483_s2] sm:$0xff]  ;;  %v529_v10 = vld [vmem:[%s1468_s5 + $0x18] sm:$0xff]  ;;  %v528_v11 = vld [vmem:[%s1468_s5 + $0x10] sm:$0xff]  ;;  %s1012_s30 = sshll.u32 %s1342_s29, 5  ;;  %s446_s2 = scalar_lea.vmem %s1463_s0, %s1342_s29 }
  0x1b   : > { %v488_v9 = vld [vmem:[%s1482_s3] sm:$0xff]  ;;  %v527_v13 = vld [vmem:[%s1468_s5 + $0x8] sm:$0xff]  ;;  %s451_s18 = scalar_lea.vmem %s1464_s1, %s1012_s30  ;;  %v718_v17 = vld [vmem:[%s1470_s7 + $0x18] sm:$0xff]  ;;  %s440_s29 = scalar_lea.vmem [#allocation3], %s439_s22 }
  0x1c   : > { %v1107_v12 = vld [vmem:[%s1467_s4] sm:$0xff]   ;;  %v629_v15 = vld [vmem:[%s451_s18 + $0x18] sm:$0xff]  ;;  %v628_v16 = vld [vmem:[%s451_s18 + $0x10] sm:$0xff]  ;;  %s913_s3 = sshll.u32 %s440_s29, 4  ;;  %s914_s3 = int_to_ptr.vmem [resolvable:$true] %s913_s3 }
  0x1d   : > { %v526_v14 = vld [vmem:[%s1468_s5] sm:$0xff]  ;;  %1029 = vmatprep.mubr.msk.bf16.mxu0 %vm560_vm0, %v1107_v12  ;;  %v717_v18 = vld [vmem:[%s1470_s7 + $0x10] sm:$0xff]  ;;  %v627_v19 = vld [vmem:[%s451_s18 + $0x8] sm:$0xff]  ;;  %s1113_s19 = scalar_lea.vmem %s914_s3, 16 }
  0x1e   : > { %509 = vperm.xlu1 %1106, %v491_v4   ;;  %475 = vperm.xlu0 %1105, %v457_v5   ;;  %v626_v20 = vld [vmem:[%s451_s18] sm:$0xff]  ;;  %v716_v21 = vld [vmem:[%s1470_s7 + $0x8] sm:$0xff]  ;;  %v756_v25 = vld [vmem:[%s1472_s9 + $0x18] sm:$0xff]  ;;  %p1114_p12 = scmp.ne.s32.totalorder %s914_s3, %s1113_s19  ;;  %s1117_s18 = sshll.u32 %s1192_s20, 4  ;;  %s1118_s18 = int_to_ptr.vmem [resolvable:$false] %s1117_s18 }
  0x1f   : > { %v715_v22 = vld [vmem:[%s1470_s7] sm:$0xff]  ;;  %v754_v23 = vld [vmem:[%s1472_s9 + $0x8] sm:$0xff]  ;;  %v755_v26 = vld [vmem:[%s1472_s9 + $0x10] sm:$0xff]  ;;  %p1120_p1 = scmp.lt.s32.totalorder %s914_s3, %s1118_s18 }
  0x20   : > { %v753_v24 = vld [vmem:[%s1472_s9] sm:$0xff]  ;;  %v851_v27 = vld [vmem:[%s1473_s10 + $0x8] sm:$0xff]  ;;  %v853_v29 = vld [vmem:[%s1473_s10 + $0x18] sm:$0xff]  ;;  %p1115_p13 = pnand %p1114_p12, %p1301_p4 }
  0x21   : > { %v850_v28 = vld [vmem:[%s1473_s10] sm:$0xff]  ;;  %v852_v30 = vld [vmem:[%s1473_s10 + $0x10] sm:$0xff]  ;;  %v1108_v55 = vld [vmem:[%s1467_s4 + $0x8] sm:$0xff]  }
  0x22   : > { %465 = vperm.xlu1 %1106, %v455_v6   ;;  %460 = vperm.xlu0 %1105, %v454_v7   ;;  %v887_v31 = vld [vmem:[#allocation2] sm:$0x1]  ;;  %p1116_p0 = pneg %p1115_p13 }
  0x23   : > { %v996_v32 = vld [vmem:[%s446_s2] ss:$0 sm:$0xff]  ;;  %s1009_s2 = sshll.u32 %s1181_s26, 4  ;;  %s1119_s26 = scalar_lea.vmem %s1118_s18, 32 }
  0x24   : > { %v1109_v56 = vld [vmem:[%s1469_s6] sm:$0xff]   ;;  %s911_s13 = scalar_lea.hbm %s1475_s12, %s1009_s2  ;;  %p1121_p2 = scmp.lt.s32.totalorder %s1119_s26, %s1113_s19 }
  0x25   : > { %1037 = vmatprep.mubr.msk.bf16.mxu1 %vm560_vm0, %v1109_v56  ;;  %v1111_v12 = vld [vmem:[%s1471_s8] sm:$0xff]  }
  0x26   : > { %499 = vperm.xlu1 %1106, %v489_v8   ;;  %494 = vperm.xlu0 %1105, %v488_v9   ;;  %p1122_p3 = por %p1121_p2, %p1120_p1 }
  0x28   : > { %p1123_p5 = pnand %p1122_p3, %p1116_p0 }
  0x2a   : > { %547 = vperm.xlu1 %1106, %v529_v10   ;;  %542 = vperm.xlu0 %1105, %v528_v11   ;;  %v1110_v11 = vld [vmem:[%s1469_s6 + $0x8] sm:$0xff]  }
  0x2e   : > { %537 = vperm.xlu1 %1106, %v527_v13   ;;  %532 = vperm.xlu0 %1105, %v526_v14  }
  0x32   : > { %647 = vperm.xlu1 %1106, %v629_v15   ;;  %642 = vperm.xlu0 %1105, %v628_v16  }
  0x36   : > { %736 = vperm.xlu1 %1106, %v718_v17   ;;  %731 = vperm.xlu0 %1105, %v717_v18  }
  0x3a   : > { %637 = vperm.xlu1 %1106, %v627_v19   ;;  %632 = vperm.xlu0 %1105, %v626_v20  }
  0x3e   : > { %726 = vperm.xlu1 %1106, %v716_v21   ;;  %721 = vperm.xlu0 %1105, %v715_v22  }
  0x42   : > { %764 = vperm.xlu1 %1106, %v754_v23   ;;  %759 = vperm.xlu0 %1105, %v753_v24  }
  0x46   : > { %774 = vperm.xlu1 %1106, %v756_v25   ;;  %769 = vperm.xlu0 %1105, %v755_v26  }
  0x4a   : > { %861 = vperm.xlu1 %1106, %v851_v27   ;;  %856 = vperm.xlu0 %1105, %v850_v28  }
  0x4e   : > { %871 = vperm.xlu1 %1106, %v853_v29   ;;  %866 = vperm.xlu0 %1105, %v852_v30  }
  0x52   : > { %890 = vperm.xlu0 %1105, %v887_v31  }
  0x95   : > { %v505_v33 = vpop.permute.xlu1 %504  ;;  %v471_v34 = vpop.permute.xlu0 %470 }
  0x96   : > { %v486_v35 = vmul.f32 %v996_v32, %v471_v34 }
  0x98   : > { %v514_v38 = vadd.f32 %v505_v33, %v486_v35 }
  0x99   : > { %v510_v36 = vpop.permute.xlu1 %509  ;;  %v476_v37 = vpop.permute.xlu0 %475 }
  0x9a   : > { %v487_v39 = vmul.f32 %v996_v32, %v476_v37  ;;  %v518_v43 = vmax.f32 %v514_v38, 0.0 }
  0x9c   : > { %v515_v40 = vadd.f32 %v510_v36, %v487_v39  ;;  %v1112_v39 = vld [vmem:[%s1471_s8 + $0x8] sm:$0xff]  }
  0x9d   : > { %v466_v41 = vpop.permute.xlu1 %465  ;;  %v461_v42 = vpop.permute.xlu0 %460 }
  0x9e   : > { %v519_v44 = vmax.f32 %v515_v40, 0.0  ;;  %v485_v45 = vmul.f32 %v996_v32, %v466_v41  ;;  %v484_v46 = vmul.f32 %v996_v32, %v461_v42 }
  0xa0   : > { %v525_v47 = vpack.c.bf16 %v519_v44, %v518_v43 }
  0xa1   : > { %v500_v48 = vpop.permute.xlu1 %499  ;;  %v495_v49 = vpop.permute.xlu0 %494 }
  0xa2   : > { %v513_v50 = vadd.f32 %v500_v48, %v485_v45  ;;  %v512_v51 = vadd.f32 %v495_v49, %v484_v46  ;;  %1025 = vmatprep.subr.bf16.mxu0 %v525_v47 }
  0xa3   : > { %1026 = vmatpush3.bf16.msra.mxu0 %v525_v47 }
  0xa4   : > { %v517_v52 = vmax.f32 %v513_v50, 0.0  ;;  %v516_v53 = vmax.f32 %v512_v51, 0.0 }
  0xa5   : > { %v543_v57 = vpop.permute.xlu0 %542  ;;  %v548_v58 = vpop.permute.xlu1 %547 }
  0xa6   : > { %v524_v54 = vpack.c.bf16 %v517_v52, %v516_v53 }
  0xa8   : > { %1027 = vmatprep.subr.bf16.mxu0 %v524_v54 }
  0xa9   : > { %1028 = vmatpush3.bf16.msra.mxu0 %v524_v54  ;;  %v533_v62 = vpop.permute.xlu0 %532  ;;  %v538_v2 = vpop.permute.xlu1 %537 }
  0xac   : > { %1030 = vmatmul.mubr.msk.bf16.vlgmr.msra.gmra.mxu0 %vm560_vm0, %v1108_v55 }
  0xad   : > { %1045 = vmatprep.mubr.msk.bf16.mxu0 %vm560_vm0, %v1111_v12  ;;  %v643_v13 = vpop.permute.xlu0 %642  ;;  %v648_v14 = vpop.permute.xlu1 %647 }
  0xb1   : > { %v732_v15 = vpop.permute.xlu0 %731  ;;  %v737_v16 = vpop.permute.xlu1 %736 }
  0xb5   : > { %v633_v17 = vpop.permute.xlu0 %632  ;;  %v638_v20 = vpop.permute.xlu1 %637 }
  0xb9   : > { %v722_v26 = vpop.permute.xlu0 %721  ;;  %v727_v31 = vpop.permute.xlu1 %726 }
  0xbd   : > { %v760_v40 = vpop.permute.xlu0 %759  ;;  %v765_v41 = vpop.permute.xlu1 %764 }
  0xc1   : > { %v770_v43 = vpop.permute.xlu0 %769  ;;  %v775_v47 = vpop.permute.xlu1 %774 }
  0xc5   : > { %v857_v54 = vpop.permute.xlu0 %856 }
 0x16c   : > { %v1031_v59 = vpop.f32.mrf.mxu0 }
 0x16d   : > { %v610_v61 = vadd.f32 %v1031_v59, %v543_v57 }
 0x16e   : > { %v601_v60 = vpop.f32.mrf.mxu0 }
 0x16f   : > { %v602_v0 = vadd.f32 %v601_v60, %v533_v62  ;;  %v618_v4 = vmax.f32 %v610_v61, 0.0 }
 0x170   : > { %v1032_v63 = vpop.f32.mrf.mxu0 }
 0x171   : > { %v613_v1 = vadd.f32 %v1032_v63, %v548_v58  ;;  %v616_v7 = vmax.f32 %v602_v0, 0.0  ;;  %v862_v58 = vpop.permute.xlu1 %861  ;;  %v867_v0 = vpop.permute.xlu0 %866 }
 0x172   : > { %v604_v3 = vpop.f32.mrf.mxu0 }
 0x173   : > { %v619_v5 = vmax.f32 %v613_v1, 0.0  ;;  %v605_v6 = vadd.f32 %v604_v3, %v538_v2 }
 0x175   : > { %v617_v8 = vmax.f32 %v605_v6, 0.0  ;;  %v625_v9 = vpack.c.bf16 %v619_v5, %v618_v4  ;;  %v872_v3 = vpop.permute.xlu1 %871  ;;  %v893_v6 = vlaneseq }
 0x177   : > { %v624_v10 = vpack.c.bf16 %v617_v8, %v616_v7  ;;  %1033 = vmatprep.subr.bf16.mxu1 %v625_v9 }
 0x178   : > { %1034 = vmatpush3.bf16.msra.mxu1 %v625_v9  ;;  %v894_v9 = vshrl.u32 %v893_v6, 7 }
 0x179   : > { %1035 = vmatprep.subr.bf16.mxu1 %v624_v10 }
 0x17a   : > { %v895_v12 = vsub.s32 0, %v894_v9 }
 0x17c   : > { %1036 = vmatpush3.bf16.msra.mxu1 %v624_v10 }
 0x17f   : > { %1038 = vmatmul.mubr.msk.bf16.vlgmr.msra.gmra.mxu1 %vm560_vm0, %v1110_v11 }
 0x23f   : > { %v1039_v18 = vpop.f32.mrf.mxu1 }
 0x240   : > { %v709_v19 = vadd.f32 %v1039_v18, %v643_v13 }
 0x241   : > { %v700_v21 = vpop.f32.mrf.mxu1 }
 0x242   : > { %v701_v22 = vadd.f32 %v700_v21, %v633_v17  ;;  %v741_v24 = vadd.f32 %v732_v15, %v709_v19 }
 0x243   : > { %v1040_v23 = vpop.f32.mrf.mxu1 }
 0x244   : > { %v712_v25 = vadd.f32 %v1040_v23, %v648_v14  ;;  %v739_v28 = vadd.f32 %v722_v26, %v701_v22  ;;  %v745_v32 = vmax.f32 %v741_v24, 0.0  ;;  %v891_v14 = vpop.permute.xlu0 %890 }
 0x245   : > { %v703_v27 = vpop.f32.mrf.mxu1 }
 0x246   : > { %v742_v29 = vadd.f32 %v737_v16, %v712_v25  ;;  %v704_v30 = vadd.f32 %v703_v27, %v638_v20  ;;  %v743_v35 = vmax.f32 %v739_v28, 0.0  ;;  %v896_v16 = vrot.slane %v891_v14, %v895_v12 }
 0x248   : > { %v746_v33 = vmax.f32 %v742_v29, 0.0  ;;  %v740_v34 = vadd.f32 %v727_v31, %v704_v30 }
 0x24a   : > { %v744_v36 = vmax.f32 %v740_v34, 0.0  ;;  %v752_v37 = vpack.c.bf16 %v746_v33, %v745_v32 }
 0x24c   : > { %1041 = vmatprep.subr.bf16.mxu0 %v752_v37  ;;  %v751_v38 = vpack.c.bf16 %v744_v36, %v743_v35 }
 0x24d   : > { %1042 = vmatpush3.bf16.msra.mxu0 %v752_v37 }
 0x24e   : > { %1043 = vmatprep.subr.bf16.mxu0 %v751_v38 }
 0x251   : > { %1044 = vmatpush3.bf16.msra.mxu0 %v751_v38 }
 0x254   : > { %1046 = vmatmul.mubr.msk.bf16.vlgmr.msra.gmra.mxu0 %vm560_vm0, %v1112_v39 }
 0x314   : > { %v1047_v42 = vpop.f32.mrf.mxu0 }
 0x315   : > { %v836_v45 = vadd.f32 %v1047_v42, %v770_v43 }
 0x316   : > { %v827_v44 = vpop.f32.mrf.mxu0 }
 0x317   : > { %v828_v46 = vadd.f32 %v827_v44, %v760_v40  ;;  %v844_v52 = vmax.f32 %v836_v45, 0.0 }
 0x318   : > { %v1048_v48 = vpop.f32.mrf.mxu0 }
 0x319   : > { %v842_v49 = vmax.f32 %v828_v46, 0.0  ;;  %v839_v50 = vadd.f32 %v1048_v48, %v775_v47  ;;  %v848_v59 = vadd.f32 %v844_v52, %v745_v32 }
 0x31a   : > { %v830_v51 = vpop.f32.mrf.mxu0 }
 0x31b   : > { %v831_v53 = vadd.f32 %v830_v51, %v765_v41  ;;  %v846_v55 = vadd.f32 %v842_v49, %v743_v35  ;;  %v845_v56 = vmax.f32 %v839_v50, 0.0  ;;  %v876_v1 = vmul.f32 %v867_v0, %v848_v59 }
 0x31d   : > { %v843_v57 = vmax.f32 %v831_v53, 0.0  ;;  %v874_v61 = vmul.f32 %v857_v54, %v846_v55  ;;  %v849_v62 = vadd.f32 %v845_v56, %v746_v33 }
 0x31f   : > { %v847_v60 = vadd.f32 %v843_v57, %v744_v36  ;;  %v877_v4 = vmul.f32 %v872_v3, %v849_v62 }
 0x321   : > { %v875_v63 = vmul.f32 %v862_v58, %v847_v60 }
 0x323   : > { %v878_v2 = vadd.f32 %v875_v63, %v874_v61 }
 0x325   : > { %v879_v5 = vadd.f32 %v878_v2, %v876_v1 }
 0x327   : > { %v880_v7 = vadd.f32 %v879_v5, %v877_v4 }
 0x329   : > { %v881_v8 = vrot.slane %v880_v7, 4 }
 0x32b   : > { %v882_v10 = vadd.f32 %v881_v8, %v880_v7 }
 0x32d   : > { %v883_v11 = vrot.slane %v882_v10, 2 }
 0x32f   : > { %v884_v13 = vadd.f32 %v883_v11, %v882_v10 }
 0x331   : > { %v885_v15 = vrot.slane %v884_v13, 1 }
 0x333   : > { %v886_v17 = vadd.f32 %v885_v15, %v884_v13 }
 0x335   : > { %v897_v18 = vadd.f32 %v896_v16, %v886_v17 }
 0x337   : > { %898 = vst [vmem:[%s440_s29] sm:$0x1] %v897_v18 }
 0x338   : > { %1126 = shalt.err (!%p1123_p5)
}
 0x339   : > { %s1127_s21 = scalar_lea.hbm %s911_s13, 16  ;;  %s1131_s29 = scalar_lea.hbm %s1475_s12, 64 }
 0x33a   : > { %p1128_p6 = scmp.ne.s32.totalorder %s911_s13, %s1127_s21  ;;  %p1132_p10 = scmp.lt.s32.totalorder %s911_s13, %s1475_s12 }
 0x33b   : > { %p1133_p11 = scmp.lt.s32.totalorder %s1131_s29, %s1127_s21 }
 0x33c   : > { %p1129_p7 = pnand %p1128_p6, %p1301_p4 }
 0x33d   : > { %p1134_p12 = por %p1133_p11, %p1132_p10 }
 0x33e   : > { %p1130_p9 = pneg %p1129_p7 }
 0x340   : > { %p1135_p13 = pnand %p1134_p12, %p1130_p9 }
 0x342   : > { %1138 = shalt.err (!%p1135_p13)
}
 0x343   : > { %1049 = dma.vmem_to_hbm [thread:$0]  (%p1301_p4), %s914_s3, 16, %s911_s13, %s900_s15  }
 0x344 PF: > { %p1055_p0 = scmp.ge.s32.totalorder %s1189_s28, 2  ;;  %s925_s19 = sand.u32 1, %s1169_s23  }
 0x345   : > { %s926_s20 = scalar_lea.sflag [#allocation4], %s925_s19 }
 0x346   : > { %p1052_p1 = pnand %p1055_p0, %p1308_p8 }
 0x348   : > { %p1053_p2 = pneg %p1052_p1 }
 0x34a   : > { %1164 = dma.done.wait (%p1053_p2), %s926_s20, 16  }
 0x34b   : > { %1166 = vsyncadd (%p1053_p2), %s926_s20, 4294967280  ;;  %s27_s28 = sadd.s32 1, %s1189_s28   ;;  %s1484_s14 = sld [smem:[#allocation6_spill]] }
 0x34c   : > { %p24_p3 = scmp.ge.s32.totalorder %s27_s28, 6   ;;  %s1485_s23 = smov %s1173_s24 }
 0x34d   : > { %s1486_s24 = smov %s1177_s25  ;;  %s1487_s25 = smov %s1314_s17 }
 0x34e   : > { %s1488_s26 = smov %s1185_s27  ;;  %26 = sbr.rel (!%p24_p3) target bundleno = 7 (0x7), region = 106 }
 0x351   : > { %s1489_s27 = smov %s1484_s14 }
 0x353   :  { %930 = vsyncpa [#allocation4], 1 }
 0x354   :  { %932 = vsyncpa [#allocation4 + $0x1], 1 }

// kernel: tpu_custom_call.1
= control target key start
LH: loop header
LB: loop body
LE: loop exit
PB: predicated region body
PF: predicated region fallthrough
CT: control target
= control target key end

     0   :  { %s1463_s0 = inlined_call_operand.vmem [shape: f32[4,1,128], index: 0, kind: input, shape index: {}]   ;;  %s1464_s1 = inlined_call_operand.vmem [shape: f32[4,32,1], index: 1, kind: input, shape index: {}]   ;;  %s1465_s2 = inlined_call_operand.vmem [shape: f32[32,1], index: 2, kind: input, shape index: {}]   ;;  %s1466_s3 = inlined_call_operand.vmem [shape: f32[32,1], index: 3, kind: input, shape index: {}]   ;;  %s1467_s4 = inlined_call_operand.vmem [shape: bf16[32,32], index: 4, kind: input, shape index: {}]   ;;  %s1468_s5 = inlined_call_operand.vmem [shape: f32[32,1], index: 5, kind: input, shape index: {}]   ;;  %s1469_s6 = inlined_call_operand.vmem [shape: bf16[32,32], index: 6, kind: input, shape index: {}]   ;;  %s1470_s7 = inlined_call_operand.vmem [shape: f32[32,1], index: 7, kind: input, shape index: {}]   ;;  %s1471_s8 = inlined_call_operand.vmem [shape: bf16[32,32], index: 8, kind: input, shape index: {}]   ;;  %s1472_s9 = inlined_call_operand.vmem [shape: f32[32,1], index: 9, kind: input, shape index: {}]   ;;  %s1473_s10 = inlined_call_operand.vmem [shape: f32[32,1], index: 10, kind: input, shape index: {}]   ;;  %s1474_s11 = inlined_call_operand.<no memory space> [shape: f32[1,1], index: 11, kind: input, shape index: {}]   ;;  %s1475_s12 = inlined_call_operand.hbm [shape: f32[4,1,128], index: 12, kind: output, shape index: {}]  }
   0x1   :  { %1477 = sst [smem:[#allocation7_spill]] %s1465_s2  ;;  %v17_v0 = vstv %s1474_s11 }
   0x2   :  { %1478 = sst [smem:[#allocation8_spill]] %s1466_s3  ;;  %18 = vst [vmem:[#allocation2] sm:$0x1] %v17_v0 }
   0x3   :  { %19 = vsyncpa [#allocation4], 0 }
   0x4   :  { %21 = vsyncpa [#allocation4 + $0x1], 0  ;;  %s1261_s23 = smov 0   ;;  %s1263_s24 = smov 0  }
   0x5   :  { %s1265_s25 = smov 0   ;;  %s1267_s26 = smov 0  }
   0x6   :  { %s1269_s27 = smov 0   ;;  %s1271_s28 = smov 0  }
   0x7 LB: > { %s989_s11 = sadd.s32 4294967295, %s1189_s28   ;;  %s990_s29 = sadd.s32 4294967294, %s1189_s28   ;;  %s1189_s28 = sphi %s1271_s28, %s27_s28   ;;  %s1185_s27 = sphi %s1269_s27, %s1489_s27   ;;  %s1181_s26 = sphi %s1267_s26, %s1488_s26   ;;  %s1177_s25 = sphi %s1265_s25, %s1487_s25   ;;  %s1173_s24 = sphi %s1263_s24, %s1486_s24   ;;  %s1169_s23 = sphi %s1261_s23, %s1485_s23  }
   0x8   : > { %s39_s30 = sadd.s32 1, %s1185_s27  ;;  %s312_s13 = sadd.s32 1, %s1177_s25 }
   0x9   : > { %p41_p0 = scmp.ge.s32.totalorder %s39_s30, 4  ;;  %p322_p1 = scmp.ne.s32.totalorder %s1177_s25, %s1173_s24 }
   0xa   : > { %p323_p2 = scmp.eq.s32.totalorder %s989_s11, 3  ;;  %p328_p3 = scmp.ne.s32.totalorder %s1173_s24, %s1169_s23 }
   0xb   : > { %s1491_s30 = smov (%p41_p0, %s39_s30), 0  ;;  %p329_p5 = scmp.eq.s32.totalorder %s990_s29, 3 }
   0xc   : > { %1479 = sst [smem:[#allocation6_spill]] %s1491_s30  ;;  %p1301_p4 = por %p323_p2, %p322_p1 }
   0xd   : > { %s307_s15 = ssub.s32 %s1185_s27, %s1491_s30  ;;  %p993_p6 = scmp.ge.s32.totalorder %s1189_s28, 1 }
   0xe   : > { %p310_p7 = scmp.eq.s32.totalorder %s307_s15, 0  ;;  %p1308_p8 = por %p329_p5, %p328_p3 }
   0xf   : > { %p394_p9 = scmp.lt.s32.totalorder %s1189_s28, 5 }
  0x10   : > { %s1314_s17 = scalar_select %p310_p7, %s1177_s25, %s312_s13  }
  0x11   : > { %p395_p10 = pnand %p993_p6, %p394_p9 }
  0x12   : > { %s1482_s3 = sld [smem:[#allocation8_spill]] (!%p395_p10)  ;;  %p441_p11 = scmp.lt.s32.totalorder (!%p395_p10), %s1181_s26, 3 }
  0x13   : > { %398 = sbr.rel (%p395_p10) target bundleno = 836 (0x344), region = 68  ;;  %s1483_s2 = sld [smem:[#allocation7_spill]] (!%p395_p10) }
  0x14   : > { %s439_s22 = sand.u32 (!%p395_p10), 1, %s1173_s24   ;;  %s1192_s20 = smov (!%p395_p10), [#allocation3]  }
  0x15   : > { %s900_s15 = scalar_lea.sflag (!%p395_p10), [#allocation4], %s439_s22 }
  0x18   : > { %v490_v1 = vld [vmem:[%s1482_s3 + $0x10] sm:$0xff]  ;;  %v1191_v3 = vmov 0   ;;  %v491_v4 = vld [vmem:[%s1482_s3 + $0x18] sm:$0xff]  ;;  %v489_v8 = vld [vmem:[%s1482_s3 + $0x8] sm:$0xff]  ;;  %s1342_s29 = scalar_select %p441_p11, %s1181_s26, 3  ;;  %vm560_vm0 = vcmask 261120  }
  0x19   : > { %v456_v2 = vld [vmem:[%s1483_s2 + $0x10] sm:$0xff]  ;;  %1106 = vset.pattern.permute.xlu1 %v1191_v3  ;;  %1105 = vset.pattern.permute.xlu0 %v1191_v3  ;;  %v457_v5 = vld [vmem:[%s1483_s2 + $0x18] sm:$0xff]  ;;  %v455_v6 = vld [vmem:[%s1483_s2 + $0x8] sm:$0xff] }
  0x1a   : > { %504 = vperm.xlu1 %1106, %v490_v1   ;;  %470 = vperm.xlu0 %1105, %v456_v2   ;;  %v454_v7 = vld [vmem:[%s1483_s2] sm:$0xff]  ;;  %v529_v10 = vld [vmem:[%s1468_s5 + $0x18] sm:$0xff]  ;;  %v528_v11 = vld [vmem:[%s1468_s5 + $0x10] sm:$0xff]  ;;  %s1012_s30 = sshll.u32 %s1342_s29, 5  ;;  %s446_s2 = scalar_lea.vmem %s1463_s0, %s1342_s29 }
  0x1b   : > { %v488_v9 = vld [vmem:[%s1482_s3] sm:$0xff]  ;;  %v527_v13 = vld [vmem:[%s1468_s5 + $0x8] sm:$0xff]  ;;  %s451_s18 = scalar_lea.vmem %s1464_s1, %s1012_s30  ;;  %v718_v17 = vld [vmem:[%s1470_s7 + $0x18] sm:$0xff]  ;;  %s440_s29 = scalar_lea.vmem [#allocation3], %s439_s22 }
  0x1c   : > { %v1107_v12 = vld [vmem:[%s1467_s4] sm:$0xff]   ;;  %v629_v15 = vld [vmem:[%s451_s18 + $0x18] sm:$0xff]  ;;  %v628_v16 = vld [vmem:[%s451_s18 + $0x10] sm:$0xff]  ;;  %s913_s3 = sshll.u32 %s440_s29, 4  ;;  %s914_s3 = int_to_ptr.vmem [resolvable:$true] %s913_s3 }
  0x1d   : > { %v526_v14 = vld [vmem:[%s1468_s5] sm:$0xff]  ;;  %1029 = vmatprep.mubr.msk.bf16.mxu0 %vm560_vm0, %v1107_v12  ;;  %v717_v18 = vld [vmem:[%s1470_s7 + $0x10] sm:$0xff]  ;;  %v627_v19 = vld [vmem:[%s451_s18 + $0x8] sm:$0xff]  ;;  %s1113_s19 = scalar_lea.vmem %s914_s3, 16 }
  0x1e   : > { %509 = vperm.xlu1 %1106, %v491_v4   ;;  %475 = vperm.xlu0 %1105, %v457_v5   ;;  %v626_v20 = vld [vmem:[%s451_s18] sm:$0xff]  ;;  %v716_v21 = vld [vmem:[%s1470_s7 + $0x8] sm:$0xff]  ;;  %v756_v25 = vld [vmem:[%s1472_s9 + $0x18] sm:$0xff]  ;;  %p1114_p12 = scmp.ne.s32.totalorder %s914_s3, %s1113_s19  ;;  %s1117_s18 = sshll.u32 %s1192_s20, 4  ;;  %s1118_s18 = int_to_ptr.vmem [resolvable:$false] %s1117_s18 }
  0x1f   : > { %v715_v22 = vld [vmem:[%s1470_s7] sm:$0xff]  ;;  %v754_v23 = vld [vmem:[%s1472_s9 + $0x8] sm:$0xff]  ;;  %v755_v26 = vld [vmem:[%s1472_s9 + $0x10] sm:$0xff]  ;;  %p1120_p1 = scmp.lt.s32.totalorder %s914_s3, %s1118_s18 }
  0x20   : > { %v753_v24 = vld [vmem:[%s1472_s9] sm:$0xff]  ;;  %v851_v27 = vld [vmem:[%s1473_s10 + $0x8] sm:$0xff]  ;;  %v853_v29 = vld [vmem:[%s1473_s10 + $0x18] sm:$0xff]  ;;  %p1115_p13 = pnand %p1114_p12, %p1301_p4 }
  0x21   : > { %v850_v28 = vld [vmem:[%s1473_s10] sm:$0xff]  ;;  %v852_v30 = vld [vmem:[%s1473_s10 + $0x10] sm:$0xff]  ;;  %v1108_v55 = vld [vmem:[%s1467_s4 + $0x8] sm:$0xff]  }
  0x22   : > { %465 = vperm.xlu1 %1106, %v455_v6   ;;  %460 = vperm.xlu0 %1105, %v454_v7   ;;  %v887_v31 = vld [vmem:[#allocation2] sm:$0x1]  ;;  %p1116_p0 = pneg %p1115_p13 }
  0x23   : > { %v996_v32 = vld [vmem:[%s446_s2] ss:$0 sm:$0xff]  ;;  %s1009_s2 = sshll.u32 %s1181_s26, 4  ;;  %s1119_s26 = scalar_lea.vmem %s1118_s18, 32 }
  0x24   : > { %v1109_v56 = vld [vmem:[%s1469_s6] sm:$0xff]   ;;  %s911_s13 = scalar_lea.hbm %s1475_s12, %s1009_s2  ;;  %p1121_p2 = scmp.lt.s32.totalorder %s1119_s26, %s1113_s19 }
  0x25   : > { %1037 = vmatprep.mubr.msk.bf16.mxu1 %vm560_vm0, %v1109_v56  ;;  %v1111_v12 = vld [vmem:[%s1471_s8] sm:$0xff]  }
  0x26   : > { %499 = vperm.xlu1 %1106, %v489_v8   ;;  %494 = vperm.xlu0 %1105, %v488_v9   ;;  %p1122_p3 = por %p1121_p2, %p1120_p1 }
  0x28   : > { %p1123_p5 = pnand %p1122_p3, %p1116_p0 }
  0x2a   : > { %547 = vperm.xlu1 %1106, %v529_v10   ;;  %542 = vperm.xlu0 %1105, %v528_v11   ;;  %v1110_v11 = vld [vmem:[%s1469_s6 + $0x8] sm:$0xff]  }
  0x2e   : > { %537 = vperm.xlu1 %1106, %v527_v13   ;;  %532 = vperm.xlu0 %1105, %v526_v14  }
  0x32   : > { %647 = vperm.xlu1 %1106, %v629_v15   ;;  %642 = vperm.xlu0 %1105, %v628_v16  }
  0x36   : > { %736 = vperm.xlu1 %1106, %v718_v17   ;;  %731 = vperm.xlu0 %1105, %v717_v18  }
  0x3a   : > { %637 = vperm.xlu1 %1106, %v627_v19   ;;  %632 = vperm.xlu0 %1105, %v626_v20  }
  0x3e   : > { %726 = vperm.xlu1 %1106, %v716_v21   ;;  %721 = vperm.xlu0 %1105, %v715_v22  }
  0x42   : > { %764 = vperm.xlu1 %1106, %v754_v23   ;;  %759 = vperm.xlu0 %1105, %v753_v24  }
  0x46   : > { %774 = vperm.xlu1 %1106, %v756_v25   ;;  %769 = vperm.xlu0 %1105, %v755_v26  }
  0x4a   : > { %861 = vperm.xlu1 %1106, %v851_v27   ;;  %856 = vperm.xlu0 %1105, %v850_v28  }
  0x4e   : > { %871 = vperm.xlu1 %1106, %v853_v29   ;;  %866 = vperm.xlu0 %1105, %v852_v30  }
  0x52   : > { %890 = vperm.xlu0 %1105, %v887_v31  }
  0x95   : > { %v505_v33 = vpop.permute.xlu1 %504  ;;  %v471_v34 = vpop.permute.xlu0 %470 }
  0x96   : > { %v486_v35 = vmul.f32 %v996_v32, %v471_v34 }
  0x98   : > { %v514_v38 = vadd.f32 %v505_v33, %v486_v35 }
  0x99   : > { %v510_v36 = vpop.permute.xlu1 %509  ;;  %v476_v37 = vpop.permute.xlu0 %475 }
  0x9a   : > { %v487_v39 = vmul.f32 %v996_v32, %v476_v37  ;;  %v518_v43 = vmax.f32 %v514_v38, 0.0 }
  0x9c   : > { %v515_v40 = vadd.f32 %v510_v36, %v487_v39  ;;  %v1112_v39 = vld [vmem:[%s1471_s8 + $0x8] sm:$0xff]  }
  0x9d   : > { %v466_v41 = vpop.permute.xlu1 %465  ;;  %v461_v42 = vpop.permute.xlu0 %460 }
  0x9e   : > { %v519_v44 = vmax.f32 %v515_v40, 0.0  ;;  %v485_v45 = vmul.f32 %v996_v32, %v466_v41  ;;  %v484_v46 = vmul.f32 %v996_v32, %v461_v42 }
  0xa0   : > { %v525_v47 = vpack.c.bf16 %v519_v44, %v518_v43 }
  0xa1   : > { %v500_v48 = vpop.permute.xlu1 %499  ;;  %v495_v49 = vpop.permute.xlu0 %494 }
  0xa2   : > { %v513_v50 = vadd.f32 %v500_v48, %v485_v45  ;;  %v512_v51 = vadd.f32 %v495_v49, %v484_v46  ;;  %1025 = vmatprep.subr.bf16.mxu0 %v525_v47 }
  0xa3   : > { %1026 = vmatpush3.bf16.msra.mxu0 %v525_v47 }
  0xa4   : > { %v517_v52 = vmax.f32 %v513_v50, 0.0  ;;  %v516_v53 = vmax.f32 %v512_v51, 0.0 }
  0xa5   : > { %v543_v57 = vpop.permute.xlu0 %542  ;;  %v548_v58 = vpop.permute.xlu1 %547 }
  0xa6   : > { %v524_v54 = vpack.c.bf16 %v517_v52, %v516_v53 }
  0xa8   : > { %1027 = vmatprep.subr.bf16.mxu0 %v524_v54 }
  0xa9   : > { %1028 = vmatpush3.bf16.msra.mxu0 %v524_v54  ;;  %v533_v62 = vpop.permute.xlu0 %532  ;;  %v538_v2 = vpop.permute.xlu1 %537 }
  0xac   : > { %1030 = vmatmul.mubr.msk.bf16.vlgmr.msra.gmra.mxu0 %vm560_vm0, %v1108_v55 }
  0xad   : > { %1045 = vmatprep.mubr.msk.bf16.mxu0 %vm560_vm0, %v1111_v12  ;;  %v643_v13 = vpop.permute.xlu0 %642  ;;  %v648_v14 = vpop.permute.xlu1 %647 }
  0xb1   : > { %v732_v15 = vpop.permute.xlu0 %731  ;;  %v737_v16 = vpop.permute.xlu1 %736 }
  0xb5   : > { %v633_v17 = vpop.permute.xlu0 %632  ;;  %v638_v20 = vpop.permute.xlu1 %637 }
  0xb9   : > { %v722_v26 = vpop.permute.xlu0 %721  ;;  %v727_v31 = vpop.permute.xlu1 %726 }
  0xbd   : > { %v760_v40 = vpop.permute.xlu0 %759  ;;  %v765_v41 = vpop.permute.xlu1 %764 }
  0xc1   : > { %v770_v43 = vpop.permute.xlu0 %769  ;;  %v775_v47 = vpop.permute.xlu1 %774 }
  0xc5   : > { %v857_v54 = vpop.permute.xlu0 %856 }
 0x16c   : > { %v1031_v59 = vpop.f32.mrf.mxu0 }
 0x16d   : > { %v610_v61 = vadd.f32 %v1031_v59, %v543_v57 }
 0x16e   : > { %v601_v60 = vpop.f32.mrf.mxu0 }
 0x16f   : > { %v602_v0 = vadd.f32 %v601_v60, %v533_v62  ;;  %v618_v4 = vmax.f32 %v610_v61, 0.0 }
 0x170   : > { %v1032_v63 = vpop.f32.mrf.mxu0 }
 0x171   : > { %v613_v1 = vadd.f32 %v1032_v63, %v548_v58  ;;  %v616_v7 = vmax.f32 %v602_v0, 0.0  ;;  %v862_v58 = vpop.permute.xlu1 %861  ;;  %v867_v0 = vpop.permute.xlu0 %866 }
 0x172   : > { %v604_v3 = vpop.f32.mrf.mxu0 }
 0x173   : > { %v619_v5 = vmax.f32 %v613_v1, 0.0  ;;  %v605_v6 = vadd.f32 %v604_v3, %v538_v2 }
 0x175   : > { %v617_v8 = vmax.f32 %v605_v6, 0.0  ;;  %v625_v9 = vpack.c.bf16 %v619_v5, %v618_v4  ;;  %v872_v3 = vpop.permute.xlu1 %871  ;;  %v893_v6 = vlaneseq }
 0x177   : > { %v624_v10 = vpack.c.bf16 %v617_v8, %v616_v7  ;;  %1033 = vmatprep.subr.bf16.mxu1 %v625_v9 }
 0x178   : > { %1034 = vmatpush3.bf16.msra.mxu1 %v625_v9  ;;  %v894_v9 = vshrl.u32 %v893_v6, 7 }
 0x179   : > { %1035 = vmatprep.subr.bf16.mxu1 %v624_v10 }
 0x17a   : > { %v895_v12 = vsub.s32 0, %v894_v9 }
 0x17c   : > { %1036 = vmatpush3.bf16.msra.mxu1 %v624_v10 }
 0x17f   : > { %1038 = vmatmul.mubr.msk.bf16.vlgmr.msra.gmra.mxu1 %vm560_vm0, %v1110_v11 }
 0x23f   : > { %v1039_v18 = vpop.f32.mrf.mxu1 }
 0x240   : > { %v709_v19 = vadd.f32 %v1039_v18, %v643_v13 }
 0x241   : > { %v700_v21 = vpop.f32.mrf.mxu1 }
 0x242   : > { %v701_v22 = vadd.f32 %v700_v21, %v633_v17  ;;  %v741_v24 = vadd.f32 %v732_v15, %v709_v19 }
 0x243   : > { %v1040_v23 = vpop.f32.mrf.mxu1 }
 0x244   : > { %v712_v25 = vadd.f32 %v1040_v23, %v648_v14  ;;  %v739_v28 = vadd.f32 %v722_v26, %v701_v22  ;;  %v745_v32 = vmax.f32 %v741_v24, 0.0  ;;  %v891_v14 = vpop.permute.xlu0 %890 }
 0x245   : > { %v703_v27 = vpop.f32.mrf.mxu1 }
 0x246   : > { %v742_v29 = vadd.f32 %v737_v16, %v712_v25  ;;  %v704_v30 = vadd.f32 %v703_v27, %v638_v20  ;;  %v743_v35 = vmax.f32 %v739_v28, 0.0  ;;  %v896_v16 = vrot.slane %v891_v14, %v895_v12 }
 0x248   : > { %v746_v33 = vmax.f32 %v742_v29, 0.0  ;;  %v740_v34 = vadd.f32 %v727_v31, %v704_v30 }
 0x24a   : > { %v744_v36 = vmax.f32 %v740_v34, 0.0  ;;  %v752_v37 = vpack.c.bf16 %v746_v33, %v745_v32 }
 0x24c   : > { %1041 = vmatprep.subr.bf16.mxu0 %v752_v37  ;;  %v751_v38 = vpack.c.bf16 %v744_v36, %v743_v35 }
 0x24d   : > { %1042 = vmatpush3.bf16.msra.mxu0 %v752_v37 }
 0x24e   : > { %1043 = vmatprep.subr.bf16.mxu0 %v751_v38 }
 0x251   : > { %1044 = vmatpush3.bf16.msra.mxu0 %v751_v38 }
 0x254   : > { %1046 = vmatmul.mubr.msk.bf16.vlgmr.msra.gmra.mxu0 %vm560_vm0, %v1112_v39 }
 0x314   : > { %v1047_v42 = vpop.f32.mrf.mxu0 }
 0x315   : > { %v836_v45 = vadd.f32 %v1047_v42, %v770_v43 }
 0x316   : > { %v827_v44 = vpop.f32.mrf.mxu0 }
 0x317   : > { %v828_v46 = vadd.f32 %v827_v44, %v760_v40  ;;  %v844_v52 = vmax.f32 %v836_v45, 0.0 }
 0x318   : > { %v1048_v48 = vpop.f32.mrf.mxu0 }
 0x319   : > { %v842_v49 = vmax.f32 %v828_v46, 0.0  ;;  %v839_v50 = vadd.f32 %v1048_v48, %v775_v47  ;;  %v848_v59 = vadd.f32 %v844_v52, %v745_v32 }
 0x31a   : > { %v830_v51 = vpop.f32.mrf.mxu0 }
 0x31b   : > { %v831_v53 = vadd.f32 %v830_v51, %v765_v41  ;;  %v846_v55 = vadd.f32 %v842_v49, %v743_v35  ;;  %v845_v56 = vmax.f32 %v839_v50, 0.0  ;;  %v876_v1 = vmul.f32 %v867_v0, %v848_v59 }
 0x31d   : > { %v843_v57 = vmax.f32 %v831_v53, 0.0  ;;  %v874_v61 = vmul.f32 %v857_v54, %v846_v55  ;;  %v849_v62 = vadd.f32 %v845_v56, %v746_v33 }
 0x31f   : > { %v847_v60 = vadd.f32 %v843_v57, %v744_v36  ;;  %v877_v4 = vmul.f32 %v872_v3, %v849_v62 }
 0x321   : > { %v875_v63 = vmul.f32 %v862_v58, %v847_v60 }
 0x323   : > { %v878_v2 = vadd.f32 %v875_v63, %v874_v61 }
 0x325   : > { %v879_v5 = vadd.f32 %v878_v2, %v876_v1 }
 0x327   : > { %v880_v7 = vadd.f32 %v879_v5, %v877_v4 }
 0x329   : > { %v881_v8 = vrot.slane %v880_v7, 4 }
 0x32b   : > { %v882_v10 = vadd.f32 %v881_v8, %v880_v7 }
 0x32d   : > { %v883_v11 = vrot.slane %v882_v10, 2 }
 0x32f   : > { %v884_v13 = vadd.f32 %v883_v11, %v882_v10 }
 0x331   : > { %v885_v15 = vrot.slane %v884_v13, 1 }
 0x333   : > { %v886_v17 = vadd.f32 %v885_v15, %v884_v13 }
 0x335   : > { %v897_v18 = vadd.f32 %v896_v16, %v886_v17 }
 0x337   : > { %898 = vst [vmem:[%s440_s29] sm:$0x1] %v897_v18 }
 0x338   : > { %1126 = shalt.err (!%p1123_p5)
}
 0x339   : > { %s1127_s21 = scalar_lea.hbm %s911_s13, 16  ;;  %s1131_s29 = scalar_lea.hbm %s1475_s12, 64 }
 0x33a   : > { %p1128_p6 = scmp.ne.s32.totalorder %s911_s13, %s1127_s21  ;;  %p1132_p10 = scmp.lt.s32.totalorder %s911_s13, %s1475_s12 }
 0x33b   : > { %p1133_p11 = scmp.lt.s32.totalorder %s1131_s29, %s1127_s21 }
 0x33c   : > { %p1129_p7 = pnand %p1128_p6, %p1301_p4 }
 0x33d   : > { %p1134_p12 = por %p1133_p11, %p1132_p10 }
 0x33e   : > { %p1130_p9 = pneg %p1129_p7 }
 0x340   : > { %p1135_p13 = pnand %p1134_p12, %p1130_p9 }
 0x342   : > { %1138 = shalt.err (!%p1135_p13)
}
 0x343   : > { %1049 = dma.vmem_to_hbm [thread:$0]  (%p1301_p4), %s914_s3, 16, %s911_s13, %s900_s15  }
 0x344 PF: > { %p1055_p0 = scmp.ge.s32.totalorder %s1189_s28, 2  ;;  %s925_s19 = sand.u32 1, %s1169_s23  }
 0x345   : > { %s926_s20 = scalar_lea.sflag [#allocation4], %s925_s19 }
 0x346   : > { %p1052_p1 = pnand %p1055_p0, %p1308_p8 }
 0x348   : > { %p1053_p2 = pneg %p1052_p1 }
 0x34a   : > { %1164 = dma.done.wait (%p1053_p2), %s926_s20, 16  }
 0x34b   : > { %1166 = vsyncadd (%p1053_p2), %s926_s20, 4294967280  ;;  %s27_s28 = sadd.s32 1, %s1189_s28   ;;  %s1484_s14 = sld [smem:[#allocation6_spill]] }
 0x34c   : > { %p24_p3 = scmp.ge.s32.totalorder %s27_s28, 6   ;;  %s1485_s23 = smov %s1173_s24 }
 0x34d   : > { %s1486_s24 = smov %s1177_s25  ;;  %s1487_s25 = smov %s1314_s17 }
 0x34e   : > { %s1488_s26 = smov %s1185_s27  ;;  %26 = sbr.rel (!%p24_p3) target bundleno = 7 (0x7), region = 106 }
 0x351   : > { %s1489_s27 = smov %s1484_s14 }
 0x353   :  { %930 = vsyncpa [#allocation4], 1 }
 0x354   :  { %932 = vsyncpa [#allocation4 + $0x1], 1 }

</bundles_post_ra>
